<compile_context>
chip_gen: v6e
topology: v6e:2x2x1
jax: 0.10.0
libtpu: 0.0.40
codegen_flags: <defaults>
</compile_context>

<pallas_src>
import jax
import jax.numpy as jnp
from jax.experimental import pallas as pl
from jax.experimental.pallas import tpu as pltpu

H1 = 512          # first hidden width
H2 = 256          # second hidden width
OUT_PAD = 128     # lane-padded width of the final (scalar) output layer


def _round_up(n, m):
    return ((n + m - 1) // m) * m


def _discriminator_kernel(x_ref, w1_ref, b1_ref, w2_ref, b2_ref,
                          w3_ref, b3_ref, o_ref):
    # Layer 1: (TB, D) @ (D, 512) + (1, 512)   -- bf16 operands, f32 accumulate
    x = x_ref[...].astype(jnp.bfloat16)
    h1 = jnp.dot(x, w1_ref[...],
                 preferred_element_type=jnp.float32) + b1_ref[...]
    # Layer 2: (TB, 512) @ (512, 256) + (1, 256)
    h2 = jnp.dot(h1.astype(jnp.bfloat16), w2_ref[...],
                 preferred_element_type=jnp.float32) + b2_ref[...]
    # Layer 3 (lane-padded): (TB, 256) @ (256, 128) + (1, 128)
    h3 = jnp.dot(h2.astype(jnp.bfloat16), w3_ref[...],
                 preferred_element_type=jnp.float32) + b3_ref[...]
    # Sigmoid: exp on the EUP, reciprocal via approx EUP path (VPU stays free).
    o_ref[...] = pl.reciprocal(1.0 + jnp.exp(-h3), approx=True)


def aae_discriminator_forward(x, params, *, block_b=1024):
    """x: (B, latent_dim) f32; params: dict of (in, out) weights + (1, out) biases."""
    B, D = x.shape

    # Cast weights to bf16 for the MXU; biases stay f32 (added to f32 acc).
    # (In a real training loop, do this preprocessing once, not per call.)
    w1 = params["w1"].astype(jnp.bfloat16)                       # (D,   512)
    b1 = params["b1"].astype(jnp.float32)                        # (1,   512)
    w2 = params["w2"].astype(jnp.bfloat16)                       # (512, 256)
    b2 = params["b2"].astype(jnp.float32)                        # (1,   256)
    # Zero-pad the scalar output layer to 128 lanes (lane-dense output block).
    w3 = jnp.pad(params["w3"].astype(jnp.bfloat16),
                 ((0, 0), (0, OUT_PAD - params["w3"].shape[1]))) # (256, 128)
    b3 = jnp.pad(params["b3"].astype(jnp.float32),
                 ((0, 0), (0, OUT_PAD - params["b3"].shape[1]))) # (1,   128)

    # Batch tiling: TB multiple of 8 (f32 sublane), grid covers padded batch.
    block_b = max(8, _round_up(block_b, 8))
    b_pad8 = _round_up(B, 8)
    tb = min(block_b, b_pad8)
    nb = pl.cdiv(b_pad8, tb)
    b_pad = nb * tb
    if b_pad != B:
        x = jnp.pad(x, ((0, b_pad - B), (0, 0)))

    const_map = lambda i: (0, 0)          # weights/biases resident across grid
    batch_map = lambda i: (i, 0)          # x / out walk the batch axis

    cost = pl.CostEstimate(
        flops=2 * b_pad * (D * H1 + H1 * H2 + H2 * OUT_PAD),
        transcendentals=b_pad * OUT_PAD,
        bytes_accessed=(b_pad * D * 4 + b_pad * OUT_PAD * 4
                        + (D * H1 + H1 * H2 + H2 * OUT_PAD) * 2
                        + (H1 + H2 + OUT_PAD) * 4),
    )

    out = pl.pallas_call(
        _discriminator_kernel,
        out_shape=jax.ShapeDtypeStruct((b_pad, OUT_PAD), jnp.float32),
        grid=(nb,),
        in_specs=[
            pl.BlockSpec((tb, D), batch_map),
            pl.BlockSpec((D, H1), const_map),
            pl.BlockSpec((1, H1), const_map),
            pl.BlockSpec((H1, H2), const_map),
            pl.BlockSpec((1, H2), const_map),
            pl.BlockSpec((H2, OUT_PAD), const_map),
            pl.BlockSpec((1, OUT_PAD), const_map),
        ],
        out_specs=pl.BlockSpec((tb, OUT_PAD), batch_map),
        compiler_params=pltpu.CompilerParams(
            dimension_semantics=("parallel",)),
        cost_estimate=cost,
    )(x, w1, b1, w2, b2, w3, b3)

    # Drop batch padding and the 127 throwaway output lanes.
    return out[:B, :1]


def init_params(latent_dim, key):
    """PyTorch-Linear-like uniform fan_in init; weights stored as (in, out)."""
    ks = jax.random.split(key, 6)

    def lin(kw, kb, fan_in, fan_out):
        bound = 1.0 / jnp.sqrt(fan_in)
        w = jax.random.uniform(kw, (fan_in, fan_out), jnp.float32, -bound, bound)
        b = jax.random.uniform(kb, (1, fan_out), jnp.float32, -bound, bound)
        return w, b

    w1, b1 = lin(ks[0], ks[1], latent_dim, H1)
    w2, b2 = lin(ks[2], ks[3], H1, H2)
    w3, b3 = lin(ks[4], ks[5], H2, 1)
    return {"w1": w1, "b1": b1, "w2": w2, "b2": b2, "w3": w3, "b3": b3}


def reference_forward(x, p):
    """Pure-JAX reference with the same bf16-operand / f32-accumulate numerics."""
    h1 = jnp.dot(x.astype(jnp.bfloat16), p["w1"].astype(jnp.bfloat16),
                 preferred_element_type=jnp.float32) + p["b1"]
    h2 = jnp.dot(h1.astype(jnp.bfloat16), p["w2"].astype(jnp.bfloat16),
                 preferred_element_type=jnp.float32) + p["b2"]
    h3 = jnp.dot(h2.astype(jnp.bfloat16), p["w3"].astype(jnp.bfloat16),
                 preferred_element_type=jnp.float32) + p["b3"]
    return 1.0 / (1.0 + jnp.exp(-h3))


if __name__ == "__main__":
    latent_dim = 32
    batch = 8

    key = jax.random.PRNGKey(0)
    k_x, k_p = jax.random.split(key)
    x = jax.random.normal(k_x, (batch, latent_dim), dtype=jnp.float32)
    params = init_params(latent_dim, k_p)

    out = aae_discriminator_forward(x, params)
    out = jax.block_until_ready(out)

    ref = reference_forward(x, params)
    assert out.shape == (batch, 1), out.shape
    # Tolerance covers the approx-EUP reciprocal in the sigmoid (~1e-4 abs).
    assert jnp.allclose(out, ref, atol=2e-3, rtol=2e-3), "mismatch vs JAX reference"

    print("KERNEL_OK")
</pallas_src>

<mosaic_0001>
module attributes {stable_mosaic.version = 11 : i64} {
  func.func @_discriminator_kernel(%arg0: i32, %arg1: memref<8x32xf32, #tpu.memory_space<vmem>>, %arg2: memref<32x512xbf16, #tpu.memory_space<vmem>>, %arg3: memref<1x512xf32, #tpu.memory_space<vmem>>, %arg4: memref<512x256xbf16, #tpu.memory_space<vmem>>, %arg5: memref<1x256xf32, #tpu.memory_space<vmem>>, %arg6: memref<256x128xbf16, #tpu.memory_space<vmem>>, %arg7: memref<1x128xf32, #tpu.memory_space<vmem>>, %arg8: memref<8x128xf32, #tpu.memory_space<vmem>>) attributes {dimension_semantics = [#tpu.dimension_semantics<parallel>], iteration_bounds = array<i64: 1>, scalar_prefetch = 0 : i64, scratch_operands = 0 : i64, tpu.core_type = #tpu.core_type<tc>, window_params = [{transform_indices = @transform_0, window_bounds = array<i64: 8, 32>}, {pipeline_mode = #tpu.pipeline_mode<synchronous>, transform_indices = @transform_1, window_bounds = array<i64: 32, 512>}, {pipeline_mode = #tpu.pipeline_mode<synchronous>, transform_indices = @transform_2, window_bounds = array<i64: 1, 512>}, {pipeline_mode = #tpu.pipeline_mode<synchronous>, transform_indices = @transform_3, window_bounds = array<i64: 512, 256>}, {pipeline_mode = #tpu.pipeline_mode<synchronous>, transform_indices = @transform_4, window_bounds = array<i64: 1, 256>}, {pipeline_mode = #tpu.pipeline_mode<synchronous>, transform_indices = @transform_5, window_bounds = array<i64: 256, 128>}, {pipeline_mode = #tpu.pipeline_mode<synchronous>, transform_indices = @transform_6, window_bounds = array<i64: 1, 128>}, {transform_indices = @transform_7, window_bounds = array<i64: 8, 128>}]} {
    %c0 = arith.constant 0 : index
    %c0_0 = arith.constant 0 : index
    %0 = vector.load %arg1[%c0, %c0_0] : memref<8x32xf32, #tpu.memory_space<vmem>>, vector<8x32xf32>
    %1 = arith.truncf %0 : vector<8x32xf32> to vector<8x32xbf16>
    %c0_1 = arith.constant 0 : index
    %c0_2 = arith.constant 0 : index
    %2 = vector.load %arg2[%c0_1, %c0_2] : memref<32x512xbf16, #tpu.memory_space<vmem>>, vector<32x512xbf16>
    %cst = arith.constant dense<0.000000e+00> : vector<8x512xf32>
    %3 = tpu.matmul %1, %2, %cst {dimension_numbers = #tpu.dot_dimension_numbers<[1], [0], [0], [1], [0, 0, 1, 1], [], []>} : vector<8x32xbf16>, vector<32x512xbf16>, vector<8x512xf32> -> vector<8x512xf32>
    %c0_3 = arith.constant 0 : index
    %c0_4 = arith.constant 0 : index
    %4 = vector.load %arg3[%c0_3, %c0_4] : memref<1x512xf32, #tpu.memory_space<vmem>>, vector<1x512xf32>
    %5 = vector.broadcast %4 : vector<1x512xf32> to vector<8x512xf32>
    %6 = arith.addf %3, %5 : vector<8x512xf32>
    %7 = arith.truncf %6 : vector<8x512xf32> to vector<8x512xbf16>
    %c0_5 = arith.constant 0 : index
    %c0_6 = arith.constant 0 : index
    %8 = vector.load %arg4[%c0_5, %c0_6] : memref<512x256xbf16, #tpu.memory_space<vmem>>, vector<512x256xbf16>
    %cst_7 = arith.constant dense<0.000000e+00> : vector<8x256xf32>
    %9 = tpu.matmul %7, %8, %cst_7 {dimension_numbers = #tpu.dot_dimension_numbers<[1], [0], [0], [1], [0, 0, 1, 1], [], []>} : vector<8x512xbf16>, vector<512x256xbf16>, vector<8x256xf32> -> vector<8x256xf32>
    %c0_8 = arith.constant 0 : index
    %c0_9 = arith.constant 0 : index
    %10 = vector.load %arg5[%c0_8, %c0_9] : memref<1x256xf32, #tpu.memory_space<vmem>>, vector<1x256xf32>
    %11 = vector.broadcast %10 : vector<1x256xf32> to vector<8x256xf32>
    %12 = arith.addf %9, %11 : vector<8x256xf32>
    %13 = arith.truncf %12 : vector<8x256xf32> to vector<8x256xbf16>
    %c0_10 = arith.constant 0 : index
    %c0_11 = arith.constant 0 : index
    %14 = vector.load %arg6[%c0_10, %c0_11] : memref<256x128xbf16, #tpu.memory_space<vmem>>, vector<256x128xbf16>
    %cst_12 = arith.constant dense<0.000000e+00> : vector<8x128xf32>
    %15 = tpu.matmul %13, %14, %cst_12 {dimension_numbers = #tpu.dot_dimension_numbers<[1], [0], [0], [1], [0, 0, 1, 1], [], []>} : vector<8x256xbf16>, vector<256x128xbf16>, vector<8x128xf32> -> vector<8x128xf32>
    %c0_13 = arith.constant 0 : index
    %c0_14 = arith.constant 0 : index
    %16 = vector.load %arg7[%c0_13, %c0_14] : memref<1x128xf32, #tpu.memory_space<vmem>>, vector<1x128xf32>
    %17 = vector.broadcast %16 : vector<1x128xf32> to vector<8x128xf32>
    %18 = arith.addf %15, %17 : vector<8x128xf32>
    %cst_15 = arith.constant 0.000000e+00 : f32
    %19 = vector.broadcast %cst_15 : f32 to vector<8x128xf32>
    %20 = arith.subf %19, %18 : vector<8x128xf32>
    %21 = math.exp %20 : vector<8x128xf32>
    %cst_16 = arith.constant 1.000000e+00 : f32
    %22 = vector.broadcast %cst_16 : f32 to vector<8x128xf32>
    %23 = arith.addf %22, %21 : vector<8x128xf32>
    %24 = tpu.reciprocal %23 {approx = true} : vector<8x128xf32> -> vector<8x128xf32>
    %c0_17 = arith.constant 0 : index
    %c0_18 = arith.constant 0 : index
    %25 = vector.load %arg8[%c0_17, %c0_18] : memref<8x128xf32, #tpu.memory_space<vmem>>, vector<8x128xf32>
    tpu.vector_store %arg8[%c0_17, %c0_18], %24 {strides = array<i32>} : memref<8x128xf32, #tpu.memory_space<vmem>>, vector<8x128xf32>,
    return
  }
  func.func @transform_0(%arg0: i32) -> (i32, i32) {
    %c0_i32 = arith.constant 0 : i32
    %c0_i32_0 = arith.constant 0 : i32
    return %arg0, %c0_i32 : i32, i32
  }
  func.func @transform_1(%arg0: i32) -> (i32, i32) {
    %c0_i32 = arith.constant 0 : i32
    %c0_i32_0 = arith.constant 0 : i32
    %c0_i32_1 = arith.constant 0 : i32
    return %c0_i32, %c0_i32_0 : i32, i32
  }
  func.func @transform_2(%arg0: i32) -> (i32, i32) {
    %c0_i32 = arith.constant 0 : i32
    %c0_i32_0 = arith.constant 0 : i32
    %c0_i32_1 = arith.constant 0 : i32
    return %c0_i32, %c0_i32_0 : i32, i32
  }
  func.func @transform_3(%arg0: i32) -> (i32, i32) {
    %c0_i32 = arith.constant 0 : i32
    %c0_i32_0 = arith.constant 0 : i32
    %c0_i32_1 = arith.constant 0 : i32
    return %c0_i32, %c0_i32_0 : i32, i32
  }
  func.func @transform_4(%arg0: i32) -> (i32, i32) {
    %c0_i32 = arith.constant 0 : i32
    %c0_i32_0 = arith.constant 0 : i32
    %c0_i32_1 = arith.constant 0 : i32
    return %c0_i32, %c0_i32_0 : i32, i32
  }
  func.func @transform_5(%arg0: i32) -> (i32, i32) {
    %c0_i32 = arith.constant 0 : i32
    %c0_i32_0 = arith.constant 0 : i32
    %c0_i32_1 = arith.constant 0 : i32
    return %c0_i32, %c0_i32_0 : i32, i32
  }
  func.func @transform_6(%arg0: i32) -> (i32, i32) {
    %c0_i32 = arith.constant 0 : i32
    %c0_i32_0 = arith.constant 0 : i32
    %c0_i32_1 = arith.constant 0 : i32
    return %c0_i32, %c0_i32_0 : i32, i32
  }
  func.func @transform_7(%arg0: i32) -> (i32, i32) {
    %c0_i32 = arith.constant 0 : i32
    %c0_i32_0 = arith.constant 0 : i32
    return %arg0, %c0_i32 : i32, i32
  }
}

</mosaic_0001>

<bundles_post_ra>
// kernel: tpu_custom_call.1
= control target key start
LH: loop header
LB: loop body
LE: loop exit
PB: predicated region body
PF: predicated region fallthrough
CT: control target
= control target key end

     0   :  { %12 = vsyncpa [#allocation3], 0  ;;  %s1399_s0 = inlined_call_operand.hbm [shape: f32[8,32], index: 0, kind: input, shape index: {}]   ;;  %s1400_s1 = inlined_call_operand.hbm [shape: bf16[32,512], index: 1, kind: input, shape index: {}]   ;;  %s1401_s2 = inlined_call_operand.hbm [shape: f32[1,512], index: 2, kind: input, shape index: {}]   ;;  %s1402_s3 = inlined_call_operand.hbm [shape: bf16[512,256], index: 3, kind: input, shape index: {}]   ;;  %s1403_s4 = inlined_call_operand.vmem [shape: f32[1,256], index: 4, kind: input, shape index: {}]   ;;  %s1404_s5 = inlined_call_operand.hbm [shape: bf16[256,128], index: 5, kind: input, shape index: {}]   ;;  %s1405_s6 = inlined_call_operand.vmem [shape: f32[1,128], index: 6, kind: input, shape index: {}]   ;;  %s1406_s7 = inlined_call_operand.hbm [shape: f32[8,128], index: 7, kind: output, shape index: {}]  }
   0x1   :  { %13 = vsyncpa [#allocation6], 0 }
   0x2   :  { %14 = vsyncpa [#allocation9], 0 }
   0x3   :  { %15 = vsyncpa [#allocation4], 0  ;;  %s1314_s24 = smov [#allocation5]  }
   0x4   :  { %s31_s25 = sshll.u32 %s1314_s24, 4  ;;  %s32_s25 = int_to_ptr.vmem [resolvable:$true] %s31_s25 }
   0x5   :  { %s1194_s26 = scalar_lea.vmem %s32_s25, 1024  ;;  %p1199_p1 = scmp.lt.s32.totalorder %s32_s25, %s32_s25 }
   0x6   :  { %p1195_p0 = scmp.ne.s32.totalorder %s32_s25, %s1194_s26  ;;  %p1200_p2 = scmp.lt.s32.totalorder %s1194_s26, %s1194_s26 }
   0x8   :  { %p1201_p3 = por %p1200_p2, %p1199_p1 }
   0xa   :  { %p1202_p4 = pnand %p1201_p3, %p1195_p0 }
   0xc   :  { %1205 = shalt.err (!%p1202_p4)
}
   0xd   :  { %s1315_s27 = smov 256   ;;  %s1316_s28 = smov 16  }
   0xe   :  { %37 = dma.hbm_to_vmem [thread:$0]  %s1400_s1, 1024, %s32_s25, [#allocation6], %s1315_s27, %s1315_s27, %s1316_s28  }
   0xf   :  { %s1317_s8 = smov [#allocation8]  }
  0x10   :  { %s53_s9 = sshll.u32 %s1317_s8, 4  ;;  %s54_s9 = int_to_ptr.vmem [resolvable:$true] %s53_s9 }
  0x11   :  { %s1214_s10 = scalar_lea.vmem %s54_s9, 8192  ;;  %p1219_p6 = scmp.lt.s32.totalorder %s54_s9, %s54_s9 }
  0x12   :  { %p1215_p5 = scmp.ne.s32.totalorder %s54_s9, %s1214_s10  ;;  %p1220_p7 = scmp.lt.s32.totalorder %s1214_s10, %s1214_s10 }
  0x14   :  { %p1221_p8 = por %p1220_p7, %p1219_p6 }
  0x16   :  { %p1222_p9 = pnand %p1221_p8, %p1215_p5 }
  0x18   :  { %1225 = shalt.err (!%p1222_p9)
}
  0x19   :  { %s1318_s11 = smov 128   ;;  %s1319_s12 = smov 8  }
  0x1a   :  { %59 = dma.hbm_to_vmem [thread:$0]  %s1402_s3, 8192, %s54_s9, [#allocation9], %s1318_s11, %s1318_s11, %s1319_s12  }
  0x1b   :  { %s1320_s15 = smov [#allocation2]   ;;  %s1321_s17 = smov [#allocation7]  }
  0x1c   :  { %s22_s16 = sshll.u32 %s1320_s15, 4  ;;  %s44_s1 = sshll.u32 %s1321_s17, 4  ;;  %s23_s16 = int_to_ptr.vmem [resolvable:$true] %s22_s16  ;;  %s45_s1 = int_to_ptr.vmem [resolvable:$true] %s44_s1 }
  0x1d   :  { %s1234_s18 = scalar_lea.vmem %s23_s16, 128  ;;  %p1239_p11 = scmp.lt.s32.totalorder %s23_s16, %s23_s16 }
  0x1e   :  { %p1235_p10 = scmp.ne.s32.totalorder %s23_s16, %s1234_s18  ;;  %p1240_p12 = scmp.lt.s32.totalorder %s1234_s18, %s1234_s18 }
  0x20   :  { %p1241_p13 = por %p1240_p12, %p1239_p11 }
  0x22   :  { %p1242_p0 = pnand %p1241_p13, %p1235_p10 }
  0x24   :  { %1245 = shalt.err (!%p1242_p0)
}
  0x25   :  { %25 = dma.hbm_to_vmem [thread:$0]  %s1399_s0, 128, %s23_s16, [#allocation3]  }
  0x26   :  { %s1254_s21 = scalar_lea.vmem %s45_s1, 64  ;;  %p1259_p2 = scmp.lt.s32.totalorder %s45_s1, %s45_s1 }
  0x27   :  { %p1255_p1 = scmp.ne.s32.totalorder %s45_s1, %s1254_s21  ;;  %p1260_p3 = scmp.lt.s32.totalorder %s1254_s21, %s1254_s21 }
  0x29   :  { %p1261_p4 = por %p1260_p3, %p1259_p2 }
  0x2b   :  { %p1262_p5 = pnand %p1261_p4, %p1255_p1 }
  0x2d   :  { %1265 = shalt.err (!%p1262_p5)
}
  0x2e   :  { %47 = dma.hbm_to_vmem [thread:$0]  %s1401_s2, 64, %s45_s1, [#allocation6]  }
  0x2f   :  { %s1322_s23 = smov [#allocation10]  }
  0x30   :  { %s67_s24 = sshll.u32 %s1322_s23, 4  ;;  %s68_s24 = int_to_ptr.vmem [resolvable:$true] %s67_s24 }
  0x31   :  { %s1274_s25 = scalar_lea.vmem %s68_s24, 2048  ;;  %p1279_p7 = scmp.lt.s32.totalorder %s68_s24, %s68_s24 }
  0x32   :  { %p1275_p6 = scmp.ne.s32.totalorder %s68_s24, %s1274_s25  ;;  %p1280_p8 = scmp.lt.s32.totalorder %s1274_s25, %s1274_s25 }
  0x34   :  { %p1281_p9 = por %p1280_p8, %p1279_p7 }
  0x36   :  { %p1282_p10 = pnand %p1281_p9, %p1275_p6 }
  0x38   :  { %1285 = shalt.err (!%p1282_p10)
}
  0x39   :  { %s1323_s0 = smov 64   ;;  %s1324_s26 = smov 4  }
  0x3a   :  { %73 = dma.hbm_to_vmem [thread:$0]  %s1404_s5, 2048, %s68_s24, [#allocation9], %s1323_s0, %s1323_s0, %s1324_s26  }
  0x3b   :  { %1306 = dma.done.wait [#allocation3], 128  }
  0x3c   :  { %1307 = vsyncadd [#allocation3], 4294967168 }
  0x3d   :  { %1308 = dma.done.wait [#allocation6], 1088  }
  0x3e   :  { %1309 = vsyncadd [#allocation6], 4294966208 }
  0x3f   :  { %1310 = dma.done.wait [#allocation9], 10240  }
  0x40   :  { %1311 = vsyncadd [#allocation9], 4294957056  ;;  %v1325_v0 = vmov 0   ;;  %v1058_v1 = vld [vmem:[#allocation5 + $0x24] ss:$16 sps:$4 sm:$0xff]   ;;  %v92_v5 = vld [vmem:[#allocation2] sm:$0xff] }
  0x41   :  { %200 = vmatprep.mubr.bf16.mxu1 %v1325_v0  ;;  %v1060_v2 = vld [vmem:[#allocation5 + $0x20] ss:$16 sps:$4 sm:$0xff]   ;;  %180 = vmatprep.subr.bf16.mxu1 %v1058_v1  ;;  %v1061_v3 = vld [vmem:[#allocation5 + $0x4] ss:$16 sps:$4 sm:$0xff]   ;;  %v1066_v6 = vld [vmem:[#allocation5 + $0x2c] ss:$16 sps:$4 sm:$0xff]   ;;  %v93_v8 = vpack.c.bf16 %v92_v5, %v92_v5 }
  0x42   :  { %v1063_v4 = vld [vmem:[#allocation5] ss:$16 sps:$4 sm:$0xff]   ;;  %181 = vmatpush1.bf16.msra.mxu1 %v1060_v2  ;;  %v1064_v7 = vld [vmem:[#allocation5 + $0x28] ss:$16 sps:$4 sm:$0xff]   ;;  %v1072_v10 = vld [vmem:[#allocation8 + $0x70] ss:$8 sps:$4 sm:$0xff]  }
  0x43   :  { %182 = vmatprep.subr.bf16.mxu1 %v1061_v3  ;;  %v1070_v9 = vld [vmem:[#allocation8 + $0x74] ss:$8 sps:$4 sm:$0xff]   ;;  %vm164_vm0 = vcmask 261120   ;;  %v1073_v11 = vld [vmem:[#allocation8 + $0x64] ss:$8 sps:$4 sm:$0xff]   ;;  %s1326_s30 = smov [#allocation11]  }
  0x44   :  { %v1069_v12 = vld [vmem:[#allocation5 + $0xc] ss:$16 sps:$4 sm:$0xff]   ;;  %650 = vmatprep.subr.bf16.mxu0 %v1070_v9  ;;  %v1076_v14 = vld [vmem:[#allocation8 + $0x54] ss:$8 sps:$4 sm:$0xff]   ;;  %v1082_v18 = vld [vmem:[#allocation8 + $0x44] ss:$8 sps:$4 sm:$0xff]  }
  0x45   :  { %651 = vmatpush1.bf16.msra.mxu0 %v1072_v10  ;;  %v1075_v13 = vld [vmem:[#allocation8 + $0x60] ss:$8 sps:$4 sm:$0xff]   ;;  %v1067_v15 = vld [vmem:[#allocation5 + $0x8] ss:$16 sps:$4 sm:$0xff]   ;;  %v1081_v17 = vld [vmem:[#allocation8 + $0x50] ss:$8 sps:$4 sm:$0xff]  }
  0x46   :  { %183 = vmatpush1.bf16.msra.mxu1 %v1063_v4  ;;  %652 = vmatprep.subr.bf16.mxu0 %v1073_v11  ;;  %v1080_v16 = vld [vmem:[#allocation8 + $0x174] ss:$8 sps:$4 sm:$0xff]   ;;  %v1078_v19 = vld [vmem:[#allocation8 + $0x170] ss:$8 sps:$4 sm:$0xff]   ;;  %v1086_v20 = vld [vmem:[#allocation8 + $0x164] ss:$8 sps:$4 sm:$0xff]  }
  0x47   :  { %221 = vmatprep.subr.bf16.mxu1 %v1066_v6  ;;  %v1087_v21 = vld [vmem:[#allocation8 + $0x40] ss:$8 sps:$4 sm:$0xff]   ;;  %v1088_v22 = vld [vmem:[#allocation8 + $0x34] ss:$8 sps:$4 sm:$0xff]   ;;  %v1093_v25 = vld [vmem:[#allocation8 + $0x30] ss:$8 sps:$4 sm:$0xff]  }
  0x48   :  { %v1084_v23 = vld [vmem:[#allocation8 + $0x160] ss:$8 sps:$4 sm:$0xff]   ;;  %v1092_v24 = vld [vmem:[#allocation8 + $0x154] ss:$8 sps:$4 sm:$0xff]   ;;  %v1094_v26 = vld [vmem:[#allocation8 + $0x24] ss:$8 sps:$4 sm:$0xff]  }
  0x49   :  { %940 = vmatmul.mubr.msk.bf16.vlgmr.msra.gmra.mxu1 %vm164_vm0, %v93_v8  ;;  %653 = vmatpush1.bf16.msra.mxu0 %v1075_v13  ;;  %v1090_v27 = vld [vmem:[#allocation8 + $0x150] ss:$8 sps:$4 sm:$0xff]   ;;  %v1098_v28 = vld [vmem:[#allocation8 + $0x144] ss:$8 sps:$4 sm:$0xff]   ;;  %v1099_v29 = vld [vmem:[#allocation8 + $0x20] ss:$8 sps:$4 sm:$0xff]  }
  0x4a   :  { %222 = vmatpush1.bf16.msra.mxu1 %v1064_v7  ;;  %241 = vmatprep.mubr.bf16.mxu1 %v1325_v0  ;;  %v1100_v30 = vld [vmem:[#allocation8 + $0x14] ss:$8 sps:$4 sm:$0xff]   ;;  %v1096_v31 = vld [vmem:[#allocation8 + $0x140] ss:$8 sps:$4 sm:$0xff]   ;;  %v1105_v33 = vld [vmem:[#allocation8 + $0x10] ss:$8 sps:$4 sm:$0xff]  }
  0x4b   :  { %223 = vmatprep.subr.bf16.mxu1 %v1069_v12  ;;  %654 = vmatprep.subr.bf16.mxu0 %v1076_v14  ;;  %v1104_v32 = vld [vmem:[#allocation8 + $0x134] ss:$8 sps:$4 sm:$0xff]   ;;  %v1106_v34 = vld [vmem:[#allocation8 + $0x4] ss:$8 sps:$4 sm:$0xff]   ;;  %v1102_v35 = vld [vmem:[#allocation8 + $0x130] ss:$8 sps:$4 sm:$0xff]   ;;  %v104_v12 = vlaneseq }
  0x4c   :  { %v1110_v36 = vld [vmem:[#allocation8 + $0x124] ss:$8 sps:$4 sm:$0xff]   ;;  %v1111_v37 = vld [vmem:[#allocation8] ss:$8 sps:$4 sm:$0xff]   ;;  %v1112_v38 = vld [vmem:[#allocation8 + $0xf4] ss:$8 sps:$4 sm:$0xff]  }
  0x4d   :  { %655 = vmatpush1.bf16.msra.mxu0 %v1081_v17  ;;  %v1108_v39 = vld [vmem:[#allocation8 + $0x120] ss:$8 sps:$4 sm:$0xff]   ;;  %v1116_v40 = vld [vmem:[#allocation8 + $0x114] ss:$8 sps:$4 sm:$0xff]   ;;  %v1117_v41 = vld [vmem:[#allocation8 + $0xf0] ss:$8 sps:$4 sm:$0xff]  }
  0x4e   :  { %224 = vmatpush1.bf16.msra.mxu1 %v1067_v15  ;;  %656 = vmatprep.subr.bf16.mxu0 %v1082_v18  ;;  %v1118_v42 = vld [vmem:[#allocation8 + $0xe4] ss:$8 sps:$4 sm:$0xff]   ;;  %v1114_v43 = vld [vmem:[#allocation8 + $0x110] ss:$8 sps:$4 sm:$0xff]   ;;  %v1123_v45 = vld [vmem:[#allocation8 + $0xe0] ss:$8 sps:$4 sm:$0xff]  }
  0x4f   :  { %691 = vmatprep.subr.bf16.mxu1 %v1080_v16  ;;  %v1122_v44 = vld [vmem:[#allocation8 + $0x104] ss:$8 sps:$4 sm:$0xff]   ;;  %v1124_v46 = vld [vmem:[#allocation8 + $0xd4] ss:$8 sps:$4 sm:$0xff]   ;;  %v1120_v47 = vld [vmem:[#allocation8 + $0x100] ss:$8 sps:$4 sm:$0xff]  }
  0x50   :  { %v1128_v48 = vld [vmem:[#allocation8 + $0x1f4] ss:$8 sps:$4 sm:$0xff]   ;;  %v1129_v49 = vld [vmem:[#allocation8 + $0xd0] ss:$8 sps:$4 sm:$0xff]   ;;  %v1130_v50 = vld [vmem:[#allocation8 + $0xc4] ss:$8 sps:$4 sm:$0xff]  }
  0x51   :  { %941 = vmatmul.mubr.msk.bf16.vlgmr.msra.gmra.mxu1 %vm164_vm0, %v93_v8  ;;  %657 = vmatpush1.bf16.msra.mxu0 %v1087_v21  ;;  %v1126_v51 = vld [vmem:[#allocation8 + $0x1f0] ss:$8 sps:$4 sm:$0xff]   ;;  %v1134_v52 = vld [vmem:[#allocation8 + $0x1e4] ss:$8 sps:$4 sm:$0xff]   ;;  %v1135_v53 = vld [vmem:[#allocation8 + $0xc0] ss:$8 sps:$4 sm:$0xff]  }
  0x52   :  { %692 = vmatpush1.bf16.msra.mxu1 %v1078_v19  ;;  %658 = vmatprep.subr.bf16.mxu0 %v1088_v22  ;;  %v1136_v54 = vld [vmem:[#allocation8 + $0xb4] ss:$8 sps:$4 sm:$0xff]   ;;  %v1132_v55 = vld [vmem:[#allocation8 + $0x1e0] ss:$8 sps:$4 sm:$0xff]   ;;  %v1141_v57 = vld [vmem:[#allocation8 + $0xb0] ss:$8 sps:$4 sm:$0xff]  }
  0x53   :  { %693 = vmatprep.subr.bf16.mxu1 %v1086_v20  ;;  %v1140_v56 = vld [vmem:[#allocation8 + $0x1d4] ss:$8 sps:$4 sm:$0xff]   ;;  %v1142_v58 = vld [vmem:[#allocation8 + $0xa4] ss:$8 sps:$4 sm:$0xff]   ;;  %v1138_v59 = vld [vmem:[#allocation8 + $0x1d0] ss:$8 sps:$4 sm:$0xff]  }
  0x54   :  { %v1146_v60 = vld [vmem:[#allocation8 + $0x1c4] ss:$8 sps:$4 sm:$0xff]   ;;  %v1147_v61 = vld [vmem:[#allocation8 + $0xa0] ss:$8 sps:$4 sm:$0xff]   ;;  %v1148_v63 = vld [vmem:[#allocation8 + $0x94] ss:$8 sps:$4 sm:$0xff]  }
  0x55   :  { %659 = vmatpush1.bf16.msra.mxu0 %v1093_v25  ;;  %v1144_v62 = vld [vmem:[#allocation8 + $0x1c0] ss:$8 sps:$4 sm:$0xff]   ;;  %v1152_v0 = vld [vmem:[#allocation8 + $0x1b4] ss:$8 sps:$4 sm:$0xff]   ;;  %v1150_v1 = vld [vmem:[#allocation8 + $0x1b0] ss:$8 sps:$4 sm:$0xff]  }
  0x56   :  { %694 = vmatpush1.bf16.msra.mxu1 %v1084_v23  ;;  %660 = vmatprep.subr.bf16.mxu0 %v1094_v26  ;;  %v1153_v2 = vld [vmem:[#allocation8 + $0x90] ss:$8 sps:$4 sm:$0xff]   ;;  %v1154_v3 = vld [vmem:[#allocation8 + $0x84] ss:$8 sps:$4 sm:$0xff]   ;;  %v1156_v5 = vld [vmem:[#allocation8 + $0x1a0] ss:$8 sps:$4 sm:$0xff]  }
  0x57   :  { %695 = vmatprep.subr.bf16.mxu1 %v1092_v24  ;;  %v1158_v4 = vld [vmem:[#allocation8 + $0x1a4] ss:$8 sps:$4 sm:$0xff]   ;;  %v1159_v6 = vld [vmem:[#allocation8 + $0x80] ss:$8 sps:$4 sm:$0xff]   ;;  %v1162_v7 = vld [vmem:[#allocation8 + $0x194] ss:$8 sps:$4 sm:$0xff]  }
  0x58   :  { %v1160_v8 = vld [vmem:[#allocation8 + $0x190] ss:$8 sps:$4 sm:$0xff]   ;;  %v1165_v9 = vld [vmem:[#allocation8 + $0x184] ss:$8 sps:$4 sm:$0xff]   ;;  %v1163_v10 = vld [vmem:[#allocation8 + $0x180] ss:$8 sps:$4 sm:$0xff]  }
  0x59   :  { %661 = vmatpush1.bf16.msra.mxu0 %v1099_v29  ;;  %v1166_v11 = vld [vmem:[#allocation10 + $0x78] sm:$0xff]   ;;  %v1384_v13 = vshrl.u32 %v104_v12, 7  ;;  %s921_s8 = sshll.u32 %s1326_s30, 4  ;;  %s922_s8 = int_to_ptr.vmem [resolvable:$true] %s921_s8 }
  0x5a   :  { %696 = vmatpush1.bf16.msra.mxu1 %v1090_v27  ;;  %662 = vmatprep.subr.bf16.mxu0 %v1100_v30  ;;  %v102_v15 = vld [vmem:[#allocation7] sm:$0xf]  ;;  %s1286_s9 = scalar_lea.vmem %s922_s8, 128  ;;  %p1291_p12 = scmp.lt.s32.totalorder %s922_s8, %s922_s8 }
  0x5b   :  { %697 = vmatprep.subr.bf16.mxu1 %v1098_v28  ;;  %v106_v14 = vsub.s32 0, %v1384_v13  ;;  %v110_v16 = vsub.s32 1, %v1384_v13  ;;  %v114_v22 = vsub.s32 2, %v1384_v13  ;;  %v118_v24 = vsub.s32 3, %v1384_v13  ;;  %v1167_v27 = vld [vmem:[#allocation10 + $0x38] sm:$0xff]   ;;  %p1287_p11 = scmp.ne.s32.totalorder %s922_s8, %s1286_s9  ;;  %p1292_p13 = scmp.lt.s32.totalorder %s1286_s9, %s1286_s9 }
  0x5d   :  { %663 = vmatpush1.bf16.msra.mxu0 %v1105_v33  ;;  %v107_v17 = vrot.slane %v102_v15, %v106_v14  ;;  %v111_v18 = vrot.slane %v102_v15, %v110_v16  ;;  %v115_v30 = vrot.slane %v102_v15, %v114_v22  ;;  %p1293_p0 = por %p1292_p13, %p1291_p12 }
  0x5e   :  { %698 = vmatpush1.bf16.msra.mxu1 %v1096_v31  ;;  %664 = vmatprep.subr.bf16.mxu0 %v1106_v34  ;;  %v1168_v31 = vld [vmem:[#allocation10 + $0x70] sm:$0xff]  }
  0x5f   :  { %699 = vmatprep.subr.bf16.mxu1 %v1104_v32  ;;  %v119_v32 = vrot.slane %v102_v15, %v118_v24  ;;  %v1169_v34 = vld [vmem:[#allocation10 + $0x30] sm:$0xff]   ;;  %p1294_p1 = pnand %p1293_p0, %p1287_p11 }
  0x61   :  { %665 = vmatpush1.bf16.msra.mxu0 %v1111_v37  ;;  %v1170_v37 = vld [vmem:[#allocation10 + $0x68] sm:$0xff]  }
  0x62   :  { %700 = vmatpush1.bf16.msra.mxu1 %v1102_v35  ;;  %666 = vmatprep.subr.bf16.mxu0 %v1112_v38 }
  0x63   :  { %701 = vmatprep.subr.bf16.mxu1 %v1110_v36 }
  0x65   :  { %667 = vmatpush2.bf16.msra.mxu0 %v1117_v41  ;;  %v1171_v41 = vld [vmem:[#allocation10 + $0x28] sm:$0xff]  }
  0x66   :  { %702 = vmatpush1.bf16.msra.mxu1 %v1108_v39  ;;  %668 = vmatprep.subr.bf16.mxu0 %v1118_v42 }
  0x67   :  { %703 = vmatprep.subr.bf16.mxu1 %v1116_v40 }
  0x69   :  { %669 = vmatpush2.bf16.msra.mxu0 %v1123_v45  ;;  %v1173_v45 = vld [vmem:[#allocation10 + $0x20] sm:$0xff]  }
  0x6a   :  { %704 = vmatpush1.bf16.msra.mxu1 %v1114_v43  ;;  %670 = vmatprep.subr.bf16.mxu0 %v1124_v46  ;;  %v1174_v46 = vld [vmem:[#allocation10 + $0x58] sm:$0xff]  }
  0x6b   :  { %705 = vmatprep.subr.bf16.mxu1 %v1122_v44  ;;  %v1172_v44 = vld [vmem:[#allocation10 + $0x60] sm:$0xff]  }
  0x6d   :  { %671 = vmatpush2.bf16.msra.mxu0 %v1129_v49  ;;  %v1177_v49 = vld [vmem:[#allocation10 + $0x10] sm:$0xff]  }
  0x6e   :  { %706 = vmatpush1.bf16.msra.mxu1 %v1120_v47  ;;  %672 = vmatprep.subr.bf16.mxu0 %v1130_v50  ;;  %v1175_v47 = vld [vmem:[#allocation10 + $0x18] sm:$0xff]   ;;  %v1178_v50 = vld [vmem:[#allocation10 + $0x48] sm:$0xff]  }
  0x6f   :  { %707 = vmatprep.subr.bf16.mxu1 %v1128_v48  ;;  %v1176_v48 = vld [vmem:[#allocation10 + $0x50] sm:$0xff]  }
  0x71   :  { %673 = vmatpush2.bf16.msra.mxu0 %v1135_v53  ;;  %v1181_v53 = vld [vmem:[#allocation10] sm:$0xff]  }
  0x72   :  { %708 = vmatpush2.bf16.msra.mxu1 %v1126_v51  ;;  %674 = vmatprep.subr.bf16.mxu0 %v1136_v54  ;;  %v1179_v51 = vld [vmem:[#allocation10 + $0x8] sm:$0xff]  }
  0x73   :  { %709 = vmatprep.subr.bf16.mxu1 %v1134_v52  ;;  %v1180_v52 = vld [vmem:[#allocation10 + $0x40] sm:$0xff]  }
  0x75   :  { %675 = vmatpush2.bf16.msra.mxu0 %v1141_v57 }
  0x76   :  { %710 = vmatpush2.bf16.msra.mxu1 %v1132_v55  ;;  %676 = vmatprep.subr.bf16.mxu0 %v1142_v58  ;;  %v318_v55 = vld [vmem:[%s1403_s4] sm:$0x3] }
  0x77   :  { %711 = vmatprep.subr.bf16.mxu1 %v1140_v56  ;;  %v323_v57 = vrot.slane %v318_v55, %v106_v14 }
  0x79   :  { %677 = vmatpush2.bf16.msra.mxu0 %v1147_v61 }
  0x7a   :  { %712 = vmatpush2.bf16.msra.mxu1 %v1138_v59  ;;  %678 = vmatprep.subr.bf16.mxu0 %v1148_v63  ;;  %v327_v59 = vrot.slane %v318_v55, %v110_v16 }
  0x7b   :  { %713 = vmatprep.subr.bf16.mxu1 %v1146_v60 }
  0x7d   :  { %679 = vmatpush2.bf16.msra.mxu0 %v1153_v2 }
  0x7e   :  { %714 = vmatpush2.bf16.msra.mxu1 %v1144_v62  ;;  %680 = vmatprep.subr.bf16.mxu0 %v1154_v3 }
  0x7f   :  { %715 = vmatprep.subr.bf16.mxu1 %v1152_v0 }
  0x81   :  { %681 = vmatpush2.bf16.msra.mxu0 %v1159_v6 }
  0x82   :  { %716 = vmatpush2.bf16.msra.mxu1 %v1150_v1  ;;  %1023 = vmatprep.subr.bf16.mxu0 %v1166_v11 }
  0x83   :  { %717 = vmatprep.subr.bf16.mxu1 %v1158_v4 }
  0x86   :  { %718 = vmatpush2.bf16.msra.mxu1 %v1156_v5 }
  0x87   :  { %719 = vmatprep.subr.bf16.mxu1 %v1162_v7 }
  0x8a   :  { %720 = vmatpush2.bf16.msra.mxu1 %v1160_v8  ;;  %v1006_v8 = vld [vmem:[%s1405_s6] ss:$0 sm:$0xff] }
  0x8b   :  { %721 = vmatprep.subr.bf16.mxu1 %v1165_v9 }
  0x8e   :  { %722 = vmatpush2.bf16.msra.mxu1 %v1163_v10 }
 0x109   :  { %v202_v19 = vpop.f32.mrf.mxu1 }
 0x10a   :  { %v203_v20 = vadd.f32 %v202_v19, %v107_v17 }
 0x10b   :  { %v204_v21 = vpop.f32.mrf.mxu1 }
 0x10c   :  { %v205_v23 = vadd.f32 %v204_v21, %v111_v18  ;;  %v250_v28 = vpack.c.bf16 %v203_v20, %v203_v20 }
 0x10d   :  { %v206_v25 = vpop.f32.mrf.mxu1 }
 0x10e   :  { %v251_v26 = vpack.c.bf16 %v205_v23, %v205_v23 }
 0x10f   :  { %v207_v29 = vpop.f32.mrf.mxu1 }
 0x110   :  { %682 = vmatprep.mubr.bf16.mxu0 %v251_v26 }
 0x111   :  { %v243_v33 = vpop.f32.mrf.mxu1  ;;  %683 = vmatmul.mubr.bf16.vlgmr.msra.gmra.mxu0 %v250_v28 }
 0x112   :  { %1024 = vmatpush3.bf16.msra.mxu0 %v1167_v27  ;;  %v244_v35 = vadd.f32 %v243_v33, %v115_v30 }
 0x113   :  { %v245_v36 = vpop.f32.mrf.mxu1  ;;  %1025 = vmatprep.subr.bf16.mxu0 %v1168_v31 }
 0x114   :  { %v246_v38 = vadd.f32 %v245_v36, %v119_v32  ;;  %v252_v42 = vpack.c.bf16 %v244_v35, %v244_v35 }
 0x115   :  { %v247_v39 = vpop.f32.mrf.mxu1 }
 0x116   :  { %v253_v40 = vpack.c.bf16 %v246_v38, %v246_v38  ;;  %1026 = vmatpush3.bf16.msra.mxu0 %v1169_v34 }
 0x117   :  { %v248_v43 = vpop.f32.mrf.mxu1  ;;  %1027 = vmatprep.subr.bf16.mxu0 %v1170_v37 }
 0x118   :  { %723 = vmatprep.mubr.bf16.mxu1 %v253_v40 }
 0x119   :  { %724 = vmatmul.mubr.bf16.vlgmr.msra.gmra.mxu1 %v252_v42 }
 0x11a   :  { %1028 = vmatpush3.bf16.msra.mxu0 %v1171_v41 }
 0x11b   :  { %1029 = vmatprep.subr.bf16.mxu0 %v1172_v44 }
 0x11e   :  { %1030 = vmatpush3.bf16.msra.mxu0 %v1173_v45 }
 0x11f   :  { %1031 = vmatprep.subr.bf16.mxu0 %v1174_v46 }
 0x122   :  { %1032 = vmatpush3.bf16.msra.mxu0 %v1175_v47 }
 0x123   :  { %1033 = vmatprep.subr.bf16.mxu0 %v1176_v48 }
 0x126   :  { %1034 = vmatpush3.bf16.msra.mxu0 %v1177_v49 }
 0x127   :  { %1035 = vmatprep.subr.bf16.mxu0 %v1178_v50 }
 0x12a   :  { %1036 = vmatpush3.bf16.msra.mxu0 %v1179_v51 }
 0x12b   :  { %1037 = vmatprep.subr.bf16.mxu0 %v1180_v52 }
 0x12e   :  { %1038 = vmatpush3.bf16.msra.mxu0 %v1181_v53 }
 0x1d1   :  { %v684_v54 = vpop.f32.mrf.mxu0 }
 0x1d2   :  { %v685_v61 = vadd.f32 %v684_v54, %v323_v57 }
 0x1d3   :  { %v686_v56 = vpop.f32.mrf.mxu0 }
 0x1d4   :  { %v687_v63 = vadd.f32 %v686_v56, %v327_v59 }
 0x1d5   :  { %v688_v58 = vpop.f32.mrf.mxu0 }
 0x1d7   :  { %v689_v60 = vpop.f32.mrf.mxu0 }
 0x1d9   :  { %v725_v62 = vpop.f32.mrf.mxu1 }
 0x1da   :  { %v726_v0 = vadd.f32 %v725_v62, %v685_v61 }
 0x1db   :  { %v727_v1 = vpop.f32.mrf.mxu1 }
 0x1dc   :  { %v728_v2 = vadd.f32 %v727_v1, %v687_v63  ;;  %v732_v5 = vpack.c.bf16 %v726_v0, %v726_v0 }
 0x1dd   :  { %v729_v3 = vpop.f32.mrf.mxu1 }
 0x1de   :  { %v733_v4 = vpack.c.bf16 %v728_v2, %v728_v2 }
 0x1df   :  { %v730_v6 = vpop.f32.mrf.mxu1 }
 0x1e0   :  { %901 = vmatprep.mubr.bf16.mxu0 %v733_v4 }
 0x1e1   :  { %902 = vmatmul.mubr.bf16.vlgmr.msra.gmra.mxu0 %v732_v5 }
 0x2a1   :  { %v1039_v7 = vpop.f32.mrf.mxu0 }
 0x2a3   :  { %v1040_v9 = vpop.f32.mrf.mxu0 }
 0x2a4   :  { %v1041_v10 = vadd.f32 %v1040_v9, %v1039_v7 }
 0x2a5   :  { %v1042_v11 = vpop.f32.mrf.mxu0 }
 0x2a6   :  { %v904_v12 = vadd.f32 %v1041_v10, %v1006_v8 }
 0x2a7   :  { %v1043_v13 = vpop.f32.mrf.mxu0 }
 0x2a8   :  { %v909_v14 = vsub.f32 0.0, %v904_v12 }
 0x2aa   :  { %v910_v15 = vmul.f32 1.442695, %v909_v14 }
 0x2ac   :  { %1182 = vpow2.f32 %v910_v15 }
 0x2b9   :  { %v1183_v16 = vpop.eup %1182 }
 0x2ba   :  { %v912_v17 = vadd.f32 1.0, %v1183_v16 }
 0x2bc   :  { %1184 = vrcp.f32 %v912_v17 }
 0x2c9   :  { %v1185_v18 = vpop.eup %1184 }
 0x2ca   :  { %914 = vst [vmem:[#allocation11] sm:$0xff] %v1185_v18 }
 0x2cb   :  { %1297 = shalt.err (!%p1294_p1)
}
 0x2cc   :  { %924 = dma.vmem_to_hbm [thread:$0]  %s922_s8, 128, %s1406_s7, [#allocation4]  }
 0x2cd   :  { %1312 = dma.done.wait [#allocation4], 128  }
 0x2ce   :  { %1313 = vsyncadd [#allocation4], 4294967168 }
 0x2cf   :  { %928 = vsyncpa [#allocation3], 1 }
 0x2d0   :  { %929 = vsyncpa [#allocation6], 1 }
 0x2d1   :  { %930 = vsyncpa [#allocation9], 1 }
 0x2d2   :  { %931 = vsyncpa [#allocation4], 1 }

</bundles_post_ra>
